<compile_context>
chip_gen: v7x
topology: tpu7x:2x2x1
jax: 0.10.0
libtpu: 0.0.40
codegen_flags: <defaults>
</compile_context>

<pallas_src>
import functools

import numpy as np

import jax
import jax.numpy as jnp
from jax.experimental import pallas as pl
from jax.experimental.pallas import tpu as pltpu

K_PAD = 128  # loss index lives on the lane axis; one full lane row


def _kendall_kernel(loss_ref, ls_ref, total_ref, dL_ref, dls_ref):
    """losses/log_sigmas: (1, K_PAD) f32 in VMEM.

    Outputs:
      total_ref : (1, 1)      SMEM  -- sum_k 0.5*exp(-2*ls_k)*L_k + ls_k
      dL_ref    : (1, K_PAD)  VMEM  -- d total / d L_k          (VJP residual)
      dls_ref   : (1, K_PAD)  VMEM  -- d total / d log_sigma_k  (VJP residual)

    Pad lanes hold L=0, ls=0 -> their term is 0.5*1*0 + 0 = 0, so no mask is
    needed inside the kernel; pad-lane gradients are sliced off in the bwd.
    """
    L = loss_ref[...]            # (1, K_PAD), plain vld
    ls = ls_ref[...]             # (1, K_PAD), plain vld
    e = jnp.exp(-2.0 * ls)       # EUP
    dL = 0.5 * e                 # d total / d L_k
    dls = 1.0 - e * L            # d total / d log_sigma_k
    total_ref[0, 0] = jnp.sum(dL * L + ls)   # XLU lane reduce -> SMEM scalar
    dL_ref[...] = dL
    dls_ref[...] = dls


@functools.lru_cache(maxsize=None)
def _build_kendall(K):
    """Returns kendall(losses_k, log_sigmas_k) -> scalar, with analytic VJP.

    Both inputs are (K,) f32; padding to (1, K_PAD) happens inside (it fuses
    under the surrounding jit).
    """
    call = pl.pallas_call(
        _kendall_kernel,
        out_shape=(
            jax.ShapeDtypeStruct((1, 1), jnp.float32),        # total
            jax.ShapeDtypeStruct((1, K_PAD), jnp.float32),    # dL residual
            jax.ShapeDtypeStruct((1, K_PAD), jnp.float32),    # dls residual
        ),
        in_specs=[
            pl.BlockSpec(memory_space=pltpu.MemorySpace.VMEM),
            pl.BlockSpec(memory_space=pltpu.MemorySpace.VMEM),
        ],
        out_specs=(
            pl.BlockSpec(memory_space=pltpu.MemorySpace.SMEM),
            pl.BlockSpec(memory_space=pltpu.MemorySpace.VMEM),
            pl.BlockSpec(memory_space=pltpu.MemorySpace.VMEM),
        ),
    )

    pad = K_PAD - K

    def _run(losses_k, log_sigmas_k):
        L = jnp.pad(losses_k.astype(jnp.float32), (0, pad)).reshape(1, K_PAD)
        ls = jnp.pad(log_sigmas_k.astype(jnp.float32), (0, pad)).reshape(1, K_PAD)
        total, dL, dls = call(L, ls)
        return total[0, 0], dL, dls

    @jax.custom_vjp
    def kendall(losses_k, log_sigmas_k):
        total, _, _ = _run(losses_k, log_sigmas_k)
        return total

    def kendall_fwd(losses_k, log_sigmas_k):
        total, dL, dls = _run(losses_k, log_sigmas_k)
        return total, (dL, dls)

    def kendall_bwd(res, g):
        dL, dls = res
        # Slice back to the K real keys; pad lanes never reach the caller.
        return (g * dL[0, :K], g * dls[0, :K])

    kendall.defvjp(kendall_fwd, kendall_bwd)
    return kendall


@functools.lru_cache(maxsize=None)
def _jitted_total(present, K):
    """One fused executable per (static) presence pattern.

    `present` is a tuple of bools over loss_keys; missing keys get a zero
    loss lane and their log_sigma is zeroed by a compile-time-constant mask
    applied in the wrapper (its VJP also zeroes the corresponding grads),
    reproducing the PyTorch `continue`.
    """
    kendall = _build_kendall(K)
    all_present = all(present)
    mask_np = np.asarray(present, dtype=np.float32)   # (K,) host-side constant

    @jax.jit
    def run(log_sigmas, *present_vals):
        it = iter(present_vals)
        vals = [
            next(it).astype(jnp.float32).reshape(()) if p else jnp.float32(0.0)
            for p in present
        ]
        losses = jnp.stack(vals)                       # fuses under this jit
        ls = log_sigmas.astype(jnp.float32)
        if not all_present:
            ls = ls * jnp.asarray(mask_np)             # constant multiply, fused
        return kendall(losses, ls)

    return run


class KendallUncertaintyWeighting:
    """JAX/Pallas port of the PyTorch module (forward semantics preserved)."""

    def __init__(self, loss_keys):
        self.loss_keys = list(loss_keys)
        assert 0 < len(self.loss_keys) <= K_PAD
        # nn.Parameter(torch.zeros(1)) per key -> one contiguous (K,) f32 vector.
        self.log_sigmas = jnp.zeros((len(self.loss_keys),), dtype=jnp.float32)

    def __call__(self, loss_dict):
        present = tuple(
            (k in loss_dict) and (loss_dict[k] is not None) for k in self.loss_keys
        )
        present_vals = tuple(
            jnp.asarray(loss_dict[k], dtype=jnp.float32)
            for k, p in zip(self.loss_keys, present)
            if p
        )
        run = _jitted_total(present, len(self.loss_keys))
        return run(self.log_sigmas, *present_vals)


if __name__ == "__main__":
    loss_keys = ["new", "old", "mse"]
    module = KendallUncertaintyWeighting(loss_keys)

    # Deterministic synthetic scalar losses.
    key = jax.random.PRNGKey(0)
    k1, k2, k3 = jax.random.split(key, 3)
    loss_dict = {
        "new": jnp.abs(jax.random.normal(k1, (), dtype=jnp.float32)),
        "old": jnp.abs(jax.random.normal(k2, (), dtype=jnp.float32)),
        "mse": jnp.abs(jax.random.normal(k3, (), dtype=jnp.float32)),
        # extra key not in loss_keys -> ignored, matching the PyTorch module
        "unused": jnp.float32(123.0),
    }

    total = jax.block_until_ready(module(loss_dict))

    # Pure-JAX forward reference.
    ref = 0.0
    for i, k in enumerate(loss_keys):
        ls = module.log_sigmas[i]
        ref = ref + 0.5 * jnp.exp(-2.0 * ls) * loss_dict[k] + ls
    assert jnp.allclose(total, ref, rtol=1e-6, atol=1e-6), (total, ref)

    # Gradient-flow check (custom_vjp): d total / d log_sigma_k = 1 - L_k at ls=0.
    def loss_of_params(log_sigmas_vec):
        m = KendallUncertaintyWeighting(loss_keys)
        m.log_sigmas = log_sigmas_vec
        return m(loss_dict)

    grads = jax.block_until_ready(jax.grad(loss_of_params)(module.log_sigmas))
    expected = jnp.stack([1.0 - loss_dict[k] for k in loss_keys])
    assert jnp.allclose(grads, expected, rtol=1e-5, atol=1e-5), (grads, expected)

    # Missing-key path: skipped keys contribute nothing (PyTorch `continue`).
    partial = {"new": loss_dict["new"], "mse": loss_dict["mse"]}
    total_partial = jax.block_until_ready(module(partial))
    ref_partial = 0.5 * loss_dict["new"] + 0.5 * loss_dict["mse"]
    assert jnp.allclose(total_partial, ref_partial, rtol=1e-6, atol=1e-6), (
        total_partial,
        ref_partial,
    )

    print("KERNEL_OK")
</pallas_src>

<mosaic_0001>
module attributes {stable_mosaic.version = 11 : i64} {
  func.func @_kendall_kernel(%arg0: memref<1x128xf32, #tpu.memory_space<vmem>>, %arg1: memref<1x128xf32, #tpu.memory_space<vmem>>, %arg2: memref<1x1xf32, #tpu.memory_space<smem>>, %arg3: memref<1x128xf32, #tpu.memory_space<vmem>>, %arg4: memref<1x128xf32, #tpu.memory_space<vmem>>) attributes {dimension_semantics = [], scalar_prefetch = 0 : i64, scratch_operands = 0 : i64, tpu.core_type = #tpu.core_type<tc>} {
    %c0 = arith.constant 0 : index
    %c0_0 = arith.constant 0 : index
    %0 = vector.load %arg0[%c0, %c0_0] : memref<1x128xf32, #tpu.memory_space<vmem>>, vector<1x128xf32>
    %c0_1 = arith.constant 0 : index
    %c0_2 = arith.constant 0 : index
    %1 = vector.load %arg1[%c0_1, %c0_2] : memref<1x128xf32, #tpu.memory_space<vmem>>, vector<1x128xf32>
    %cst = arith.constant -2.000000e+00 : f32
    %2 = vector.broadcast %cst : f32 to vector<1x128xf32>
    %3 = arith.mulf %2, %1 : vector<1x128xf32>
    %4 = math.exp %3 : vector<1x128xf32>
    %cst_3 = arith.constant 5.000000e-01 : f32
    %5 = vector.broadcast %cst_3 : f32 to vector<1x128xf32>
    %6 = arith.mulf %5, %4 : vector<1x128xf32>
    %7 = arith.mulf %4, %0 : vector<1x128xf32>
    %cst_4 = arith.constant 1.000000e+00 : f32
    %8 = vector.broadcast %cst_4 : f32 to vector<1x128xf32>
    %9 = arith.subf %8, %7 : vector<1x128xf32>
    %10 = arith.mulf %6, %0 : vector<1x128xf32>
    %11 = arith.addf %10, %1 : vector<1x128xf32>
    %12 = vector.shape_cast %11 : vector<1x128xf32> to vector<1x1x128xf32>
    %cst_5 = arith.constant dense<0.000000e+00> : vector<1xf32>
    %13 = vector.multi_reduction <add>, %12, %cst_5 [1, 2] : vector<1x1x128xf32> to vector<1xf32>
    %14 = vector.shape_cast %13 : vector<1xf32> to vector<1x1x1xf32>
    %15 = vector.extract %14[0, 0, 0] : f32 from vector<1x1x1xf32>
    %c0_6 = arith.constant 0 : index
    %c0_7 = arith.constant 0 : index
    %16 = memref.load %arg2[%c0_6, %c0_7] : memref<1x1xf32, #tpu.memory_space<smem>>
    memref.store %15, %arg2[%c0_6, %c0_7] : memref<1x1xf32, #tpu.memory_space<smem>>
    %c0_8 = arith.constant 0 : index
    %c0_9 = arith.constant 0 : index
    %17 = vector.load %arg3[%c0_8, %c0_9] : memref<1x128xf32, #tpu.memory_space<vmem>>, vector<1x128xf32>
    tpu.vector_store %arg3[%c0_8, %c0_9], %6 {strides = array<i32>} : memref<1x128xf32, #tpu.memory_space<vmem>>, vector<1x128xf32>,
    %c0_10 = arith.constant 0 : index
    %c0_11 = arith.constant 0 : index
    %18 = vector.load %arg4[%c0_10, %c0_11] : memref<1x128xf32, #tpu.memory_space<vmem>>, vector<1x128xf32>
    tpu.vector_store %arg4[%c0_10, %c0_11], %9 {strides = array<i32>} : memref<1x128xf32, #tpu.memory_space<vmem>>, vector<1x128xf32>,
    return
  }
}

</mosaic_0001>

<bundles_post_ra>
// kernel: run.1
= control target key start
LH: loop header
LB: loop body
LE: loop exit
PB: predicated region body
PF: predicated region fallthrough
CT: control target
= control target key end

     0   :  { %10 = vsyncpa [#allocation4], 0  ;;  %s220_s0 = inlined_call_operand.vmem [shape: f32[1,128], index: 0, kind: input, shape index: {}]   ;;  %s221_s1 = inlined_call_operand.vmem [shape: f32[1,128], index: 1, kind: input, shape index: {}]   ;;  %s222_s2 = inlined_call_operand.hbm [shape: f32[1,1], index: 2, kind: output, shape index: {0}]   ;;  %s223_s3 = inlined_call_operand.hbm [shape: f32[1,128], index: 3, kind: output, shape index: {1}]   ;;  %s224_s4 = inlined_call_operand.hbm [shape: f32[1,128], index: 4, kind: output, shape index: {2}]  }
   0x1   :  { %11 = vsyncpa [#allocation3], 0  ;;  %v18_v0 = vld [vmem:[%s221_s1] sm:$0x1] }
   0x2   :  { %v19_v1 = vmul.f32 -2.0, %v18_v0 }
   0x3   :  { %12 = vsyncpa [#allocation7], 0  ;;  %v17_v4 = vld [vmem:[%s220_s0] sm:$0x1]  ;;  %vm27_vm0 = vcmask 1040384   ;;  %s150_s19 = smov [#allocation5]  }
   0x4   :  { %v20_v2 = vmul.f32 1.442695, %v19_v1  ;;  %s56_s1 = sshll.u32 %s150_s19, 4  ;;  %s151_s20 = smov [#allocation6]   ;;  %s57_s1 = int_to_ptr.vmem [resolvable:$true] %s56_s1 }
   0x5   :  { %s66_s21 = sshll.u32 %s151_s20, 4  ;;  %s90_s22 = scalar_lea.vmem %s57_s1, 16  ;;  %s67_s21 = int_to_ptr.vmem [resolvable:$true] %s66_s21 }
   0x6   :  { %88 = vpow2.f32 %v20_v2  ;;  %p91_p0 = scmp.ne.s32.totalorder %s57_s1, %s90_s22  ;;  %s94_s23 = scalar_lea.vmem %s57_s1, 32 }
   0x7   :  { %p95_p1 = scmp.lt.s32.totalorder %s57_s1, %s57_s1  ;;  %p96_p2 = scmp.lt.s32.totalorder %s94_s23, %s90_s22 }
   0x9   :  { %p97_p3 = por %p96_p2, %p95_p1 }
   0xb   :  { %p98_p4 = pnand %p97_p3, %p91_p0 }
  0x10   :  { %v89_v3 = vpop.eup %88 }
  0x11   :  { %v22_v5 = vmul.f32 0.5, %v89_v3  ;;  %v23_v9 = vmul.f32 %v89_v3, %v17_v4 }
  0x13   :  { %v25_v6 = vmul.f32 %v22_v5, %v17_v4  ;;  %40 = vst [vmem:[#allocation5] sm:$0x1] %v22_v5  ;;  %v24_v10 = vsub.f32 1.0, %v23_v9 }
  0x15   :  { %v26_v7 = vadd.f32 %v25_v6, %v18_v0  ;;  %41 = vst [vmem:[#allocation6] sm:$0x1] %v24_v10 }
  0x17   :  { %v28_v8 = vsel %vm27_vm0, %v26_v7, 0.0 }
  0x18   :  { %29 = vadd.xlane.f32.xlu0 %v28_v8 }
  0x19   :  { %101 = shalt.err (!%p98_p4)
}
  0x1a   :  { %s102_s25 = scalar_lea.hbm %s223_s3, 16 }
  0x1b   :  { %p103_p5 = scmp.ne.s32.totalorder %s223_s3, %s102_s25  ;;  %p106_p6 = scmp.lt.u32.totalorder %s102_s25, %s223_s3 }
  0x1d   :  { %p108_p7 = pnand %p106_p6, %p103_p5 }
  0x1f   :  { %111 = shalt.err (!%p108_p7)
}
  0x20   :  { %59 = dma.vmem_to_hbm [thread:$0]  %s57_s1, 16, %s223_s3, [#allocation3]  }
  0x21   :  { %s112_s6 = scalar_lea.vmem %s67_s21, 16  ;;  %s116_s7 = scalar_lea.vmem %s67_s21, 32 }
  0x22   :  { %p113_p8 = scmp.ne.s32.totalorder %s67_s21, %s112_s6  ;;  %p117_p9 = scmp.lt.s32.totalorder %s67_s21, %s67_s21 }
  0x23   :  { %p118_p10 = scmp.lt.s32.totalorder %s116_s7, %s112_s6 }
  0x25   :  { %p119_p11 = por %p118_p10, %p117_p9 }
  0x27   :  { %p120_p12 = pnand %p119_p11, %p113_p8 }
  0x29   :  { %123 = shalt.err (!%p120_p12)
}
  0x2a   :  { %s124_s10 = scalar_lea.hbm %s224_s4, 16 }
  0x2b   :  { %p125_p13 = scmp.ne.s32.totalorder %s224_s4, %s124_s10  ;;  %p128_p0 = scmp.lt.u32.totalorder %s124_s10, %s224_s4 }
  0x2d   :  { %p130_p1 = pnand %p128_p0, %p125_p13 }
  0x2f   :  { %133 = shalt.err (!%p130_p1)
}
  0x30   :  { %69 = dma.vmem_to_hbm [thread:$0]  %s67_s21, 16, %s224_s4, [#allocation7]  }
  0x31   :  { %s134_s19 = scalar_lea.hbm %s222_s2, 16 }
  0x32   :  { %p135_p2 = scmp.ne.s32.totalorder %s222_s2, %s134_s19  ;;  %p138_p3 = scmp.lt.u32.totalorder %s134_s19, %s222_s2 }
  0x34   :  { %p140_p4 = pnand %p138_p3, %p135_p2 }
  0xa5   :  { %v30_v11 = vpop.xlane.xlu0 %29 }
  0xa6   :  { %v31_v12 = vrot.slane %v30_v11, 4 }
  0xa8   :  { %v32_v13 = vadd.f32 %v31_v12, %v30_v11 }
  0xaa   :  { %v33_v14 = vrot.slane %v32_v13, 2 }
  0xac   :  { %v34_v15 = vadd.f32 %v33_v14, %v32_v13 }
  0xae   :  { %v35_v16 = vrot.slane %v34_v15, 1 }
  0xb0   :  { %v36_v17 = vadd.f32 %v35_v16, %v34_v15 }
  0xb2   :  { %83 = vpush %v36_v17 }
  0xe3   :  { %s84_s16 = spop %83 }
  0xe4   :  { %39 = sst [smem:[#allocation2]] %s84_s16 }
  0xe5   :  { %143 = shalt.err (!%p140_p4)
}
  0xe6   :  { %s152_s21 = smov [#allocation2]  }
  0xe7   :  { %49 = dma.smem_to_hbm %s152_s21, 16, %s222_s2, [#allocation4]  }
  0xe8   :  { %144 = dma.done.wait [#allocation4], 16  }
  0xe9   :  { %145 = vsyncadd [#allocation4], 4294967280 }
  0xea   :  { %146 = dma.done.wait [#allocation3], 16  }
  0xeb   :  { %147 = vsyncadd [#allocation3], 4294967280 }
  0xec   :  { %148 = dma.done.wait [#allocation7], 16  }
  0xed   :  { %149 = vsyncadd [#allocation7], 4294967280 }
  0xee   :  { %79 = sfence }
  0xef   :  { %80 = vsyncpa [#allocation3], 1 }
  0xf0   :  { %81 = vsyncpa [#allocation7], 1 }
  0xf1   :  { %82 = vsyncpa [#allocation4], 1 }

</bundles_post_ra>
